<compile_context>
chip_gen: v7x
topology: tpu7x:2x2x1
jax: 0.10.0
libtpu: 0.0.40
codegen_flags: <defaults>
</compile_context>

<pallas_src>
import functools
import math
import string

import jax
import jax.numpy as jnp
import numpy as np
from jax.experimental import pallas as pl
from jax.experimental.pallas import tpu as pltpu

ALL_LETTERS = string.ascii_letters + " .,;'"
N_LETTERS = len(ALL_LETTERS)          # 57  (input_size)
N_HIDDEN = 128                        # hidden_size
N_CATEGORIES = 18                     # output_size (name-classification setup)


def _round_up(x, m):
    return ((x + m - 1) // m) * m


# ---------------------------------------------------------------------------
# Pallas kernel: the full recurrence, single invocation (no grid)
# ---------------------------------------------------------------------------
def rnn_seq_kernel(x_ref,        # VMEM (T, H+Opad)      f32  pre-gathered wx[idx] + bias
                   h0_ref,       # VMEM (B, H)           f32  initial hidden
                   wh_ref,       # VMEM (H, H+Opad)      f32  [W_i2h_h | W_i2o_h(padded)]
                   logits_ref,   # VMEM (T_pad, Opad)    f32  raw i2o logits per step
                   h_out_ref,    # VMEM (B, H)           f32  final hidden
                   *, seq_len, hidden_size, unroll):
    def step(t, h):
        # One fused MXU matmul for both Linears (i2h and i2o share the input);
        # the one-hot input term + both biases are already folded into x_ref.
        x_row = x_ref[pl.ds(t, 1), :]                          # (1, H+Opad)
        r = jnp.dot(h, wh_ref[...],
                    preferred_element_type=jnp.float32) + x_row  # (1, H+Opad)
        # Raw logits go to the resident output slab (lane-aligned static slice,
        # starts at lane H=128); log-softmax happens once in the wrapper.
        logits_ref[pl.ds(t, 1), :] = r[:, hidden_size:]
        return r[:, :hidden_size]                              # new hidden

    h_final = jax.lax.fori_loop(0, seq_len, step, h0_ref[...], unroll=unroll)
    h_out_ref[...] = h_final


# ---------------------------------------------------------------------------
# Wrapper: one pallas_call for the whole sequence
# ---------------------------------------------------------------------------
@functools.partial(jax.jit, static_argnames=("output_size",))
def rnn_forward_sequence(letter_idx, h0, params, *, output_size):
    """Run the RNN over a whole sequence of letter indices in ONE pallas_call.

    letter_idx: (T,) int32 indices into ALL_LETTERS (the one-hot rows).
    h0:         (B, H) f32 initial hidden state (B = 1, as in the PyTorch module).
    Returns (log_probs (T, B, O) f32, final_hidden (B, H) f32).
    """
    T = letter_idx.shape[0]
    B, H = h0.shape
    if B != 1:
        raise ValueError("Module spec is batch=1; see TODO(synk) for batching.")
    wh = params["wh_cat"]                    # (H, H+Opad) f32
    C = wh.shape[1]
    o_pad = C - H
    t_pad = _round_up(T, 8)                  # (8,128)-aligned output slab

    # One-hot input => x @ W_x is a row gather; fold in both biases here so
    # the serial in-kernel chain is just matmul + add + store.
    x = params["wx_cat"][letter_idx] + params["b_cat"]         # (T, C) f32

    kernel = functools.partial(rnn_seq_kernel, seq_len=T, hidden_size=H,
                               unroll=bool(T <= 32))

    vmem = pl.BlockSpec(memory_space=pltpu.MemorySpace.VMEM)
    logits_pad, h_final = pl.pallas_call(
        kernel,
        in_specs=[vmem, vmem, vmem],
        out_specs=(vmem, vmem),
        out_shape=(
            jax.ShapeDtypeStruct((t_pad, o_pad), jnp.float32),  # raw logits slab
            jax.ShapeDtypeStruct((B, H), jnp.float32),          # final hidden
        ),
    )(x, h0, wh)

    # Slice the lane/sublane-padded slab to the real (T, O) and do ONE
    # vectorized log-softmax (hoisted off the serial critical path).
    logits = logits_pad[:T, :output_size]                       # (T, O)
    log_probs = jax.nn.log_softmax(logits, axis=-1)[:, None, :]  # (T, B=1, O)
    return log_probs, h_final


# ---------------------------------------------------------------------------
# Parameters: nn.Linear-style init, stored in the fused / padded kernel layout
# ---------------------------------------------------------------------------
def init_params(key, input_size, hidden_size, output_size):
    """U(-1/sqrt(fan_in), +1/sqrt(fan_in)) like nn.Linear.

    Both Linears consume cat(input, hidden), so each weight is stored
    transposed and split into an input part (row-gathered in the wrapper,
    since the input is one-hot) and a hidden part (used by the single fused
    in-kernel matmul).  The i2o columns are zero-padded to a 128-lane
    multiple; padded lanes are discarded before log-softmax, so zero padding
    is harmless.  Everything stays f32 (no bf16 recurrent drift).
    """
    fan_in = input_size + hidden_size
    bound = 1.0 / math.sqrt(fan_in)
    k = jax.random.split(key, 4)
    wih_t = jax.random.uniform(k[0], (fan_in, hidden_size), jnp.float32, -bound, bound)
    bih = jax.random.uniform(k[1], (1, hidden_size), jnp.float32, -bound, bound)
    wio_t = jax.random.uniform(k[2], (fan_in, output_size), jnp.float32, -bound, bound)
    bio = jax.random.uniform(k[3], (1, output_size), jnp.float32, -bound, bound)

    o_pad = _round_up(output_size, 128)

    def pad_o(w):
        return jnp.pad(w, ((0, 0), (0, o_pad - output_size)))

    wx_cat = jnp.concatenate([wih_t[:input_size], pad_o(wio_t[:input_size])], axis=1)
    wh_cat = jnp.concatenate([wih_t[input_size:], pad_o(wio_t[input_size:])], axis=1)
    b_cat = jnp.concatenate([bih, pad_o(bio)], axis=1)

    return {
        "wx_cat": wx_cat.astype(jnp.float32),   # (I, H+Opad)
        "wh_cat": wh_cat.astype(jnp.float32),   # (H, H+Opad)
        "b_cat": b_cat.astype(jnp.float32),     # (1, H+Opad)
    }


# ---------------------------------------------------------------------------
# Pure-JAX reference with identical math (for correctness checking)
# ---------------------------------------------------------------------------
def rnn_reference_sequence(letter_idx, h0, params, *, output_size):
    wx = params["wx_cat"]
    wh = params["wh_cat"]
    b = params["b_cat"]
    H = h0.shape[1]
    h = h0
    outs = []
    for t in range(letter_idx.shape[0]):
        x_row = wx[letter_idx[t]][None, :] + b
        r = jnp.dot(h, wh, preferred_element_type=jnp.float32,
                    precision=jax.lax.Precision.HIGHEST) + x_row
        h = r[:, :H]
        outs.append(jax.nn.log_softmax(r[:, H:H + output_size], axis=-1))
    return jnp.stack(outs), h


# ---------------------------------------------------------------------------
# Helpers mirroring the PyTorch script (line -> letter indices; no one-hot
# tensor is ever materialised — the wrapper gathers weight rows by index).
# ---------------------------------------------------------------------------
def letter_to_index(letter):
    return ALL_LETTERS.find(letter)


def line_to_indices(line):
    return jnp.asarray([letter_to_index(c) for c in line], dtype=jnp.int32)


if __name__ == "__main__":
    key = jax.random.PRNGKey(0)
    params = init_params(key, N_LETTERS, N_HIDDEN, N_CATEGORIES)

    # Example input: the name 'Albert' (T = 6), batch = 1, as in the PyTorch
    # script (RNN.initHidden()).
    letter_idx = line_to_indices("Albert")                  # (6,) int32
    h0 = jnp.zeros((1, N_HIDDEN), jnp.float32)

    log_probs, h_final = rnn_forward_sequence(
        letter_idx, h0, params, output_size=N_CATEGORIES)
    log_probs = jax.block_until_ready(log_probs)
    h_final = jax.block_until_ready(h_final)

    assert log_probs.shape == (len("Albert"), 1, N_CATEGORIES)
    assert h_final.shape == (1, N_HIDDEN)

    # Every timestep's row must sum (in prob space) to ~1.
    row_sums = np.asarray(jnp.exp(log_probs).sum(axis=-1))
    assert np.allclose(row_sums, 1.0, atol=1e-4)

    # Compare against a pure-JAX reference with identical (f32) math.
    ref_lp, ref_h = rnn_reference_sequence(
        letter_idx, h0, params, output_size=N_CATEGORIES)
    np.testing.assert_allclose(np.asarray(log_probs), np.asarray(ref_lp),
                               atol=2e-3, rtol=2e-3)
    np.testing.assert_allclose(np.asarray(h_final), np.asarray(ref_h),
                               atol=2e-3, rtol=2e-3)

    print("KERNEL_OK")
</pallas_src>

<mosaic_0001>
module attributes {stable_mosaic.version = 11 : i64} {
  func.func @rnn_seq_kernel(%arg0: memref<6x256xf32, #tpu.memory_space<vmem>>, %arg1: memref<1x128xf32, #tpu.memory_space<vmem>>, %arg2: memref<128x256xf32, #tpu.memory_space<vmem>>, %arg3: memref<8x128xf32, #tpu.memory_space<vmem>>, %arg4: memref<1x128xf32, #tpu.memory_space<vmem>>) attributes {dimension_semantics = [], scalar_prefetch = 0 : i64, scratch_operands = 0 : i64, tpu.core_type = #tpu.core_type<tc>} {
    %c0 = arith.constant 0 : index
    %c0_0 = arith.constant 0 : index
    %0 = vector.load %arg1[%c0, %c0_0] : memref<1x128xf32, #tpu.memory_space<vmem>>, vector<1x128xf32>
    %c0_i32 = arith.constant 0 : i32
    %1 = arith.index_cast %c0_i32 : i32 to index
    %c0_1 = arith.constant 0 : index
    %2 = vector.load %arg0[%1, %c0_1] : memref<6x256xf32, #tpu.memory_space<vmem>>, vector<1x256xf32>
    %c0_2 = arith.constant 0 : index
    %c0_3 = arith.constant 0 : index
    %3 = vector.load %arg2[%c0_2, %c0_3] : memref<128x256xf32, #tpu.memory_space<vmem>>, vector<128x256xf32>
    %cst = arith.constant dense<0.000000e+00> : vector<1x256xf32>
    %4 = tpu.matmul %0, %3, %cst {dimension_numbers = #tpu.dot_dimension_numbers<[1], [0], [0], [1], [0, 0, 1, 1], [], []>} : vector<1x128xf32>, vector<128x256xf32>, vector<1x256xf32> -> vector<1x256xf32>
    %5 = arith.addf %4, %2 : vector<1x256xf32>
    %6 = vector.extract_strided_slice %5 {offsets = [0, 128], sizes = [1, 128], strides = [1, 1]} : vector<1x256xf32> to vector<1x128xf32>
    %7 = arith.index_cast %c0_i32 : i32 to index
    %c0_4 = arith.constant 0 : index
    %8 = vector.load %arg3[%7, %c0_4] : memref<8x128xf32, #tpu.memory_space<vmem>>, vector<1x128xf32>
    tpu.vector_store %arg3[%7, %c0_4], %6 {strides = array<i32>} : memref<8x128xf32, #tpu.memory_space<vmem>>, vector<1x128xf32>,
    %9 = vector.extract_strided_slice %5 {offsets = [0, 0], sizes = [1, 128], strides = [1, 1]} : vector<1x256xf32> to vector<1x128xf32>
    %c1_i32 = arith.constant 1 : i32
    %10 = arith.index_cast %c1_i32 : i32 to index
    %c0_5 = arith.constant 0 : index
    %11 = vector.load %arg0[%10, %c0_5] : memref<6x256xf32, #tpu.memory_space<vmem>>, vector<1x256xf32>
    %c0_6 = arith.constant 0 : index
    %c0_7 = arith.constant 0 : index
    %12 = vector.load %arg2[%c0_6, %c0_7] : memref<128x256xf32, #tpu.memory_space<vmem>>, vector<128x256xf32>
    %cst_8 = arith.constant dense<0.000000e+00> : vector<1x256xf32>
    %13 = tpu.matmul %9, %12, %cst_8 {dimension_numbers = #tpu.dot_dimension_numbers<[1], [0], [0], [1], [0, 0, 1, 1], [], []>} : vector<1x128xf32>, vector<128x256xf32>, vector<1x256xf32> -> vector<1x256xf32>
    %14 = arith.addf %13, %11 : vector<1x256xf32>
    %15 = vector.extract_strided_slice %14 {offsets = [0, 128], sizes = [1, 128], strides = [1, 1]} : vector<1x256xf32> to vector<1x128xf32>
    %16 = arith.index_cast %c1_i32 : i32 to index
    %c0_9 = arith.constant 0 : index
    %17 = vector.load %arg3[%16, %c0_9] : memref<8x128xf32, #tpu.memory_space<vmem>>, vector<1x128xf32>
    tpu.vector_store %arg3[%16, %c0_9], %15 {strides = array<i32>} : memref<8x128xf32, #tpu.memory_space<vmem>>, vector<1x128xf32>,
    %18 = vector.extract_strided_slice %14 {offsets = [0, 0], sizes = [1, 128], strides = [1, 1]} : vector<1x256xf32> to vector<1x128xf32>
    %c2_i32 = arith.constant 2 : i32
    %19 = arith.index_cast %c2_i32 : i32 to index
    %c0_10 = arith.constant 0 : index
    %20 = vector.load %arg0[%19, %c0_10] : memref<6x256xf32, #tpu.memory_space<vmem>>, vector<1x256xf32>
    %c0_11 = arith.constant 0 : index
    %c0_12 = arith.constant 0 : index
    %21 = vector.load %arg2[%c0_11, %c0_12] : memref<128x256xf32, #tpu.memory_space<vmem>>, vector<128x256xf32>
    %cst_13 = arith.constant dense<0.000000e+00> : vector<1x256xf32>
    %22 = tpu.matmul %18, %21, %cst_13 {dimension_numbers = #tpu.dot_dimension_numbers<[1], [0], [0], [1], [0, 0, 1, 1], [], []>} : vector<1x128xf32>, vector<128x256xf32>, vector<1x256xf32> -> vector<1x256xf32>
    %23 = arith.addf %22, %20 : vector<1x256xf32>
    %24 = vector.extract_strided_slice %23 {offsets = [0, 128], sizes = [1, 128], strides = [1, 1]} : vector<1x256xf32> to vector<1x128xf32>
    %25 = arith.index_cast %c2_i32 : i32 to index
    %c0_14 = arith.constant 0 : index
    %26 = vector.load %arg3[%25, %c0_14] : memref<8x128xf32, #tpu.memory_space<vmem>>, vector<1x128xf32>
    tpu.vector_store %arg3[%25, %c0_14], %24 {strides = array<i32>} : memref<8x128xf32, #tpu.memory_space<vmem>>, vector<1x128xf32>,
    %27 = vector.extract_strided_slice %23 {offsets = [0, 0], sizes = [1, 128], strides = [1, 1]} : vector<1x256xf32> to vector<1x128xf32>
    %c3_i32 = arith.constant 3 : i32
    %28 = arith.index_cast %c3_i32 : i32 to index
    %c0_15 = arith.constant 0 : index
    %29 = vector.load %arg0[%28, %c0_15] : memref<6x256xf32, #tpu.memory_space<vmem>>, vector<1x256xf32>
    %c0_16 = arith.constant 0 : index
    %c0_17 = arith.constant 0 : index
    %30 = vector.load %arg2[%c0_16, %c0_17] : memref<128x256xf32, #tpu.memory_space<vmem>>, vector<128x256xf32>
    %cst_18 = arith.constant dense<0.000000e+00> : vector<1x256xf32>
    %31 = tpu.matmul %27, %30, %cst_18 {dimension_numbers = #tpu.dot_dimension_numbers<[1], [0], [0], [1], [0, 0, 1, 1], [], []>} : vector<1x128xf32>, vector<128x256xf32>, vector<1x256xf32> -> vector<1x256xf32>
    %32 = arith.addf %31, %29 : vector<1x256xf32>
    %33 = vector.extract_strided_slice %32 {offsets = [0, 128], sizes = [1, 128], strides = [1, 1]} : vector<1x256xf32> to vector<1x128xf32>
    %34 = arith.index_cast %c3_i32 : i32 to index
    %c0_19 = arith.constant 0 : index
    %35 = vector.load %arg3[%34, %c0_19] : memref<8x128xf32, #tpu.memory_space<vmem>>, vector<1x128xf32>
    tpu.vector_store %arg3[%34, %c0_19], %33 {strides = array<i32>} : memref<8x128xf32, #tpu.memory_space<vmem>>, vector<1x128xf32>,
    %36 = vector.extract_strided_slice %32 {offsets = [0, 0], sizes = [1, 128], strides = [1, 1]} : vector<1x256xf32> to vector<1x128xf32>
    %c4_i32 = arith.constant 4 : i32
    %37 = arith.index_cast %c4_i32 : i32 to index
    %c0_20 = arith.constant 0 : index
    %38 = vector.load %arg0[%37, %c0_20] : memref<6x256xf32, #tpu.memory_space<vmem>>, vector<1x256xf32>
    %c0_21 = arith.constant 0 : index
    %c0_22 = arith.constant 0 : index
    %39 = vector.load %arg2[%c0_21, %c0_22] : memref<128x256xf32, #tpu.memory_space<vmem>>, vector<128x256xf32>
    %cst_23 = arith.constant dense<0.000000e+00> : vector<1x256xf32>
    %40 = tpu.matmul %36, %39, %cst_23 {dimension_numbers = #tpu.dot_dimension_numbers<[1], [0], [0], [1], [0, 0, 1, 1], [], []>} : vector<1x128xf32>, vector<128x256xf32>, vector<1x256xf32> -> vector<1x256xf32>
    %41 = arith.addf %40, %38 : vector<1x256xf32>
    %42 = vector.extract_strided_slice %41 {offsets = [0, 128], sizes = [1, 128], strides = [1, 1]} : vector<1x256xf32> to vector<1x128xf32>
    %43 = arith.index_cast %c4_i32 : i32 to index
    %c0_24 = arith.constant 0 : index
    %44 = vector.load %arg3[%43, %c0_24] : memref<8x128xf32, #tpu.memory_space<vmem>>, vector<1x128xf32>
    tpu.vector_store %arg3[%43, %c0_24], %42 {strides = array<i32>} : memref<8x128xf32, #tpu.memory_space<vmem>>, vector<1x128xf32>,
    %45 = vector.extract_strided_slice %41 {offsets = [0, 0], sizes = [1, 128], strides = [1, 1]} : vector<1x256xf32> to vector<1x128xf32>
    %c5_i32 = arith.constant 5 : i32
    %46 = arith.index_cast %c5_i32 : i32 to index
    %c0_25 = arith.constant 0 : index
    %47 = vector.load %arg0[%46, %c0_25] : memref<6x256xf32, #tpu.memory_space<vmem>>, vector<1x256xf32>
    %c0_26 = arith.constant 0 : index
    %c0_27 = arith.constant 0 : index
    %48 = vector.load %arg2[%c0_26, %c0_27] : memref<128x256xf32, #tpu.memory_space<vmem>>, vector<128x256xf32>
    %cst_28 = arith.constant dense<0.000000e+00> : vector<1x256xf32>
    %49 = tpu.matmul %45, %48, %cst_28 {dimension_numbers = #tpu.dot_dimension_numbers<[1], [0], [0], [1], [0, 0, 1, 1], [], []>} : vector<1x128xf32>, vector<128x256xf32>, vector<1x256xf32> -> vector<1x256xf32>
    %50 = arith.addf %49, %47 : vector<1x256xf32>
    %51 = vector.extract_strided_slice %50 {offsets = [0, 128], sizes = [1, 128], strides = [1, 1]} : vector<1x256xf32> to vector<1x128xf32>
    %52 = arith.index_cast %c5_i32 : i32 to index
    %c0_29 = arith.constant 0 : index
    %53 = vector.load %arg3[%52, %c0_29] : memref<8x128xf32, #tpu.memory_space<vmem>>, vector<1x128xf32>
    tpu.vector_store %arg3[%52, %c0_29], %51 {strides = array<i32>} : memref<8x128xf32, #tpu.memory_space<vmem>>, vector<1x128xf32>,
    %54 = vector.extract_strided_slice %50 {offsets = [0, 0], sizes = [1, 128], strides = [1, 1]} : vector<1x256xf32> to vector<1x128xf32>
    %c6_i32 = arith.constant 6 : i32
    %c0_30 = arith.constant 0 : index
    %c0_31 = arith.constant 0 : index
    %55 = vector.load %arg4[%c0_30, %c0_31] : memref<1x128xf32, #tpu.memory_space<vmem>>, vector<1x128xf32>
    tpu.vector_store %arg4[%c0_30, %c0_31], %54 {strides = array<i32>} : memref<1x128xf32, #tpu.memory_space<vmem>>, vector<1x128xf32>,
    return
  }
}

</mosaic_0001>

<bundles_post_ra>
// kernel: rnn_forward_sequence.1
= control target key start
LH: loop header
LB: loop body
LE: loop exit
PB: predicated region body
PF: predicated region fallthrough
CT: control target
= control target key end

     0   :  { %10 = vsyncpa [#allocation3], 0  ;;  %s1246_s0 = inlined_call_operand.vmem [shape: f32[6,256], index: 0, kind: input, shape index: {}]   ;;  %s1247_s1 = inlined_call_operand.vmem [shape: f32[1,128], index: 1, kind: input, shape index: {}]   ;;  %s1248_s2 = inlined_call_operand.hbm [shape: f32[128,256], index: 2, kind: input, shape index: {}]   ;;  %s1249_s3 = inlined_call_operand.vmem [shape: f32[8,128], index: 3, kind: output, shape index: {0}]   ;;  %s1250_s4 = inlined_call_operand.hbm [shape: f32[1,128], index: 4, kind: output, shape index: {1}]  }
   0x1   :  { %11 = vsyncpa [#allocation4], 0  ;;  %s1003_s15 = smov [#allocation2]   ;;  %s955_s19 = scalar_lea.hbm %s1248_s2, 4096 }
   0x2   :  { %s21_s16 = sshll.u32 %s1003_s15, 4  ;;  %p956_p0 = scmp.ne.s32.totalorder %s1248_s2, %s955_s19  ;;  %s22_s16 = int_to_ptr.vmem [resolvable:$true] %s21_s16 }
   0x3   :  { %p959_p1 = scmp.lt.u32.totalorder %s955_s19, %s1248_s2 }
   0x5   :  { %p961_p2 = pnand %p959_p1, %p956_p0 }
   0x7   :  { %964 = shalt.err (!%p961_p2)
}
   0x8   :  { %s965_s24 = scalar_lea.vmem %s22_s16, 4096  ;;  %p970_p4 = scmp.lt.s32.totalorder %s22_s16, %s22_s16 }
   0x9   :  { %p966_p3 = scmp.ne.s32.totalorder %s22_s16, %s965_s24  ;;  %p971_p5 = scmp.lt.s32.totalorder %s965_s24, %s965_s24 }
   0xb   :  { %p972_p6 = por %p971_p5, %p970_p4 }
   0xd   :  { %p973_p7 = pnand %p972_p6, %p966_p3 }
   0xf   :  { %976 = shalt.err (!%p973_p7)
}
  0x10   :  { %s1004_s25 = smov 256   ;;  %s1005_s26 = smov 16  }
  0x11   :  { %27 = dma.hbm_to_vmem [thread:$0]  %s1248_s2, 4096, %s22_s16, [#allocation3], %s1004_s25, %s1004_s25, %s1005_s26  }
  0x12   :  { %999 = dma.done.wait [#allocation3], 4096  }
  0x13   :  { %1000 = vsyncadd [#allocation3], 4294963200  ;;  %v1006_v0 = vmov 0.0   ;;  %v34_v1 = vld [vmem:[#allocation2 + $0x8] sm:$0xff]  ;;  %v36_v2 = vld [vmem:[#allocation2 + $0x18] sm:$0xff]  ;;  %v66_v50 = vlaneseq  ;;  %s1007_s25 = smov [#allocation5]  }
  0x14   :  { %140 = vmatprep.mubr.f32.mxu0 %v1006_v0  ;;  %257 = vmatprep.mubr.f32.mxu1 %v1006_v0  ;;  %v33_v3 = vld [vmem:[#allocation2] sm:$0xff]  ;;  %v1047_v4 = vpack.c.bf16 %v36_v2, %v34_v1  ;;  %v35_v5 = vld [vmem:[#allocation2 + $0x10] sm:$0xff]  ;;  %v38_v6 = vld [vmem:[#allocation2 + $0x28] sm:$0xff]  ;;  %s742_s26 = sshll.u32 %s1007_s25, 4  ;;  %s743_s26 = int_to_ptr.vmem [resolvable:$true] %s742_s26 }
  0x15   :  { %v40_v7 = vld [vmem:[#allocation2 + $0x38] sm:$0xff]  ;;  %v1049_v8 = vpack.c.bf16 %v35_v5, %v33_v3  ;;  %v37_v10 = vld [vmem:[#allocation2 + $0x20] sm:$0xff]  ;;  %v39_v11 = vld [vmem:[#allocation2 + $0x30] sm:$0xff]  ;;  %v67_v51 = vshrl.u32 %v66_v50, 7  ;;  %s977_s2 = scalar_lea.vmem %s743_s26, 16  ;;  %s981_s29 = scalar_lea.vmem %s743_s26, 32 }
  0x16   :  { %v1051_v9 = vpack.c.bf16 %v40_v7, %v38_v6  ;;  %v42_v12 = vld [vmem:[#allocation2 + $0x48] sm:$0xff]  ;;  %759 = vmatprep.subr.bf16.mxu0 %v1047_v4  ;;  %v44_v13 = vld [vmem:[#allocation2 + $0x58] sm:$0xff]  ;;  %791 = vmatprep.subr.bf16.mxu1 %v1047_v4  ;;  %v1056_v14 = vpack.c.bf16 %v39_v11, %v37_v10  ;;  %v41_v16 = vld [vmem:[#allocation2 + $0x40] sm:$0xff]  ;;  %p978_p8 = scmp.ne.s32.totalorder %s743_s26, %s977_s2  ;;  %p982_p9 = scmp.lt.s32.totalorder %s743_s26, %s743_s26 }
  0x17   :  { %761 = vmatpush1.bf16.msra.mxu0 %v1049_v8  ;;  %793 = vmatpush1.bf16.msra.mxu1 %v1049_v8  ;;  %v1060_v15 = vpack.c.bf16 %v44_v13, %v42_v12  ;;  %v43_v17 = vld [vmem:[#allocation2 + $0x50] sm:$0xff]  ;;  %v46_v18 = vld [vmem:[#allocation2 + $0x68] sm:$0xff]  ;;  %v48_v19 = vld [vmem:[#allocation2 + $0x78] sm:$0xff]  ;;  %v1133_v52 = vsub.s32 0, %v67_v51  ;;  %v1138_v54 = vsub.s32 1, %v67_v51  ;;  %p983_p10 = scmp.lt.s32.totalorder %s981_s29, %s977_s2 }
  0x18   :  { %763 = vmatprep.subr.bf16.mxu0 %v1051_v9  ;;  %795 = vmatprep.subr.bf16.mxu1 %v1051_v9  ;;  %v1064_v20 = vpack.c.bf16 %v43_v17, %v41_v16  ;;  %v1068_v21 = vpack.c.bf16 %v48_v19, %v46_v18  ;;  %v45_v22 = vld [vmem:[#allocation2 + $0x60] sm:$0xff]  ;;  %v47_v23 = vld [vmem:[#allocation2 + $0x70] sm:$0xff]  ;;  %v50_v24 = vld [vmem:[#allocation2 + $0x88] sm:$0xff] }
  0x19   :  { %v52_v25 = vld [vmem:[#allocation2 + $0x98] sm:$0xff]  ;;  %v1072_v26 = vpack.c.bf16 %v47_v23, %v45_v22  ;;  %v49_v28 = vld [vmem:[#allocation2 + $0x80] sm:$0xff]  ;;  %v51_v29 = vld [vmem:[#allocation2 + $0x90] sm:$0xff]  ;;  %p984_p11 = por %p983_p10, %p982_p9 }
  0x1a   :  { %v1076_v27 = vpack.c.bf16 %v52_v25, %v50_v24  ;;  %v54_v30 = vld [vmem:[#allocation2 + $0xa8] sm:$0xff]  ;;  %v56_v31 = vld [vmem:[#allocation2 + $0xb8] sm:$0xff]  ;;  %v1080_v32 = vpack.c.bf16 %v51_v29, %v49_v28  ;;  %v53_v34 = vld [vmem:[#allocation2 + $0xa0] sm:$0xff] }
  0x1b   :  { %765 = vmatpush1.bf16.msra.mxu0 %v1056_v14  ;;  %797 = vmatpush1.bf16.msra.mxu1 %v1056_v14  ;;  %v1084_v33 = vpack.c.bf16 %v56_v31, %v54_v30  ;;  %v55_v35 = vld [vmem:[#allocation2 + $0xb0] sm:$0xff]  ;;  %v58_v36 = vld [vmem:[#allocation2 + $0xc8] sm:$0xff]  ;;  %v60_v37 = vld [vmem:[#allocation2 + $0xd8] sm:$0xff]  ;;  %p985_p12 = pnand %p984_p11, %p978_p8 }
  0x1c   :  { %767 = vmatprep.subr.bf16.mxu0 %v1060_v15  ;;  %799 = vmatprep.subr.bf16.mxu1 %v1060_v15  ;;  %v1088_v38 = vpack.c.bf16 %v55_v35, %v53_v34  ;;  %v1092_v39 = vpack.c.bf16 %v60_v37, %v58_v36  ;;  %v57_v40 = vld [vmem:[#allocation2 + $0xc0] sm:$0xff]  ;;  %v59_v41 = vld [vmem:[#allocation2 + $0xd0] sm:$0xff]  ;;  %v62_v42 = vld [vmem:[#allocation2 + $0xe8] sm:$0xff] }
  0x1d   :  { %v64_v43 = vld [vmem:[#allocation2 + $0xf8] sm:$0xff]  ;;  %v1096_v44 = vpack.c.bf16 %v59_v41, %v57_v40  ;;  %v61_v46 = vld [vmem:[#allocation2 + $0xe0] sm:$0xff]  ;;  %v63_v47 = vld [vmem:[#allocation2 + $0xf0] sm:$0xff] }
  0x1e   :  { %v1100_v45 = vpack.c.bf16 %v64_v43, %v62_v42  ;;  %v1104_v48 = vpack.c.bf16 %v63_v47, %v61_v46  ;;  %v31_v49 = vld [vmem:[%s1247_s1] sm:$0x1]  ;;  %v753_v61 = vld [vmem:[%s1246_s0 + $0x1] ss:$8 sm:$0x3] }
  0x1f   :  { %769 = vmatpush1.bf16.msra.mxu0 %v1064_v20  ;;  %801 = vmatpush1.bf16.msra.mxu1 %v1064_v20  ;;  %v32_v53 = vld [vmem:[%s1246_s0] ss:$8 sm:$0x3]  ;;  %v186_v62 = vrot.slane %v753_v61, %v1133_v52  ;;  %v190_v63 = vrot.slane %v753_v61, %v1138_v54  ;;  %v756_v18 = vld [vmem:[%s1246_s0 + $0x4] ss:$8 sm:$0x3] }
  0x20   :  { %771 = vmatprep.subr.bf16.mxu0 %v1068_v21  ;;  %803 = vmatprep.subr.bf16.mxu1 %v1068_v21  ;;  %v69_v55 = vrot.slane %v32_v53, %v1133_v52  ;;  %v73_v56 = vrot.slane %v32_v53, %v1138_v54  ;;  %v537_v19 = vrot.slane %v756_v18, %v1133_v52  ;;  %v757_v25 = vld [vmem:[%s1246_s0 + $0x5] ss:$8 sm:$0x3] }
  0x23   :  { %773 = vmatpush1.bf16.msra.mxu0 %v1072_v26  ;;  %805 = vmatpush1.bf16.msra.mxu1 %v1072_v26 }
  0x24   :  { %775 = vmatprep.subr.bf16.mxu0 %v1076_v27  ;;  %807 = vmatprep.subr.bf16.mxu1 %v1076_v27 }
  0x27   :  { %777 = vmatpush1.bf16.msra.mxu0 %v1080_v32  ;;  %809 = vmatpush1.bf16.msra.mxu1 %v1080_v32 }
  0x28   :  { %779 = vmatprep.subr.bf16.mxu0 %v1084_v33  ;;  %811 = vmatprep.subr.bf16.mxu1 %v1084_v33 }
  0x2b   :  { %781 = vmatpush1.bf16.msra.mxu0 %v1088_v38  ;;  %813 = vmatpush1.bf16.msra.mxu1 %v1088_v38 }
  0x2c   :  { %783 = vmatprep.subr.bf16.mxu0 %v1092_v39  ;;  %815 = vmatprep.subr.bf16.mxu1 %v1092_v39 }
  0x2f   :  { %785 = vmatpush1.bf16.msra.mxu0 %v1096_v44  ;;  %817 = vmatpush1.bf16.msra.mxu1 %v1096_v44 }
  0x30   :  { %787 = vmatprep.subr.bf16.mxu0 %v1100_v45  ;;  %819 = vmatprep.subr.bf16.mxu1 %v1100_v45 }
  0x33   :  { %789 = vmatpush1.bf16.msra.mxu0 %v1104_v48  ;;  %821 = vmatpush1.bf16.msra.mxu1 %v1104_v48 }
  0x34   :  { %823 = vmatprep.subr.bf16.mxu0 %v1047_v4  ;;  %855 = vmatprep.subr.bf16.mxu1 %v1047_v4 }
  0x36   :  { %141 = vmatmul.mubr.f32.vlgmr.msra.gmra.mrb[0].mxu0 %v31_v49 }
  0x37   :  { %825 = vmatpush1.bf16.msra.mxu0 %v1049_v8  ;;  %374 = vmatprep.mubr.f32.mxu0 %v1006_v0 }
  0x38   :  { %827 = vmatprep.subr.bf16.mxu0 %v1051_v9 }
  0x3b   :  { %829 = vmatpush1.bf16.msra.mxu0 %v1056_v14 }
  0x3c   :  { %831 = vmatprep.subr.bf16.mxu0 %v1060_v15 }
  0x3f   :  { %833 = vmatpush1.bf16.msra.mxu0 %v1064_v20 }
  0x40   :  { %835 = vmatprep.subr.bf16.mxu0 %v1068_v21 }
  0x43   :  { %837 = vmatpush1.bf16.msra.mxu0 %v1072_v26 }
  0x44   :  { %839 = vmatprep.subr.bf16.mxu0 %v1076_v27 }
  0x47   :  { %841 = vmatpush1.bf16.msra.mxu0 %v1080_v32 }
  0x48   :  { %843 = vmatprep.subr.bf16.mxu0 %v1084_v33 }
  0x4b   :  { %845 = vmatpush1.bf16.msra.mxu0 %v1088_v38 }
  0x4c   :  { %847 = vmatprep.subr.bf16.mxu0 %v1092_v39 }
  0x4f   :  { %849 = vmatpush1.bf16.msra.mxu0 %v1096_v44 }
  0x50   :  { %851 = vmatprep.subr.bf16.mxu0 %v1100_v45 }
  0x53   :  { %853 = vmatpush1.bf16.msra.mxu0 %v1104_v48 }
  0x54   :  { %887 = vmatprep.subr.bf16.mxu0 %v1047_v4 }
 0x109   :  { %v142_v57 = vpop.f32.mrb[0].mxu0 }
 0x10a   :  { %v143_v58 = vadd.f32 %v142_v57, %v69_v55  ;;  %v144_v59 = vpop.f32.mrb[1].mxu0 }
 0x10b   :  { %v145_v60 = vadd.f32 %v144_v59, %v73_v56 }
 0x10c   :  { %258 = vmatmul.mubr.f32.vlgmr.msra.gmra.mrb[0].mxu1 %v143_v58 }
 0x10d   :  { %147 = vst [vmem:[%s1249_s3] sm:$0x1] %v145_v60  ;;  %857 = vmatpush1.bf16.msra.mxu1 %v1049_v8  ;;  %491 = vmatprep.mubr.f32.mxu1 %v1006_v0 }
 0x10e   :  { %859 = vmatprep.subr.bf16.mxu1 %v1051_v9 }
 0x111   :  { %861 = vmatpush1.bf16.msra.mxu1 %v1056_v14 }
 0x112   :  { %863 = vmatprep.subr.bf16.mxu1 %v1060_v15 }
 0x115   :  { %865 = vmatpush1.bf16.msra.mxu1 %v1064_v20 }
 0x116   :  { %867 = vmatprep.subr.bf16.mxu1 %v1068_v21 }
 0x119   :  { %869 = vmatpush1.bf16.msra.mxu1 %v1072_v26 }
 0x11a   :  { %871 = vmatprep.subr.bf16.mxu1 %v1076_v27 }
 0x11d   :  { %873 = vmatpush1.bf16.msra.mxu1 %v1080_v32 }
 0x11e   :  { %875 = vmatprep.subr.bf16.mxu1 %v1084_v33 }
 0x121   :  { %877 = vmatpush1.bf16.msra.mxu1 %v1088_v38 }
 0x122   :  { %879 = vmatprep.subr.bf16.mxu1 %v1092_v39 }
 0x125   :  { %881 = vmatpush1.bf16.msra.mxu1 %v1096_v44 }
 0x126   :  { %883 = vmatprep.subr.bf16.mxu1 %v1100_v45 }
 0x129   :  { %885 = vmatpush1.bf16.msra.mxu1 %v1104_v48 }
 0x12a   :  { %919 = vmatprep.subr.bf16.mxu1 %v1047_v4  ;;  %v754_v4 = vld [vmem:[%s1246_s0 + $0x2] ss:$8 sm:$0x3] }
 0x12b   :  { %v303_v6 = vrot.slane %v754_v4, %v1133_v52  ;;  %v307_v7 = vrot.slane %v754_v4, %v1138_v54 }
 0x1df   :  { %v259_v1 = vpop.f32.mrb[0].mxu1 }
 0x1e0   :  { %v260_v2 = vadd.f32 %v259_v1, %v186_v62  ;;  %v261_v3 = vpop.f32.mrb[1].mxu1 }
 0x1e1   :  { %v262_v5 = vadd.f32 %v261_v3, %v190_v63 }
 0x1e2   :  { %375 = vmatmul.mubr.f32.vlgmr.msra.gmra.mrb[2].mxu0 %v260_v2 }
 0x1e3   :  { %264 = vst [vmem:[%s1249_s3 + $0x1] sm:$0x1] %v262_v5  ;;  %889 = vmatpush1.bf16.msra.mxu0 %v1049_v8  ;;  %608 = vmatprep.mubr.f32.mxu0 %v1006_v0 }
 0x1e4   :  { %891 = vmatprep.subr.bf16.mxu0 %v1051_v9 }
 0x1e7   :  { %893 = vmatpush1.bf16.msra.mxu0 %v1056_v14 }
 0x1e8   :  { %895 = vmatprep.subr.bf16.mxu0 %v1060_v15 }
 0x1eb   :  { %897 = vmatpush1.bf16.msra.mxu0 %v1064_v20 }
 0x1ec   :  { %899 = vmatprep.subr.bf16.mxu0 %v1068_v21 }
 0x1ef   :  { %901 = vmatpush1.bf16.msra.mxu0 %v1072_v26 }
 0x1f0   :  { %903 = vmatprep.subr.bf16.mxu0 %v1076_v27 }
 0x1f3   :  { %905 = vmatpush1.bf16.msra.mxu0 %v1080_v32 }
 0x1f4   :  { %907 = vmatprep.subr.bf16.mxu0 %v1084_v33 }
 0x1f7   :  { %909 = vmatpush1.bf16.msra.mxu0 %v1088_v38 }
 0x1f8   :  { %911 = vmatprep.subr.bf16.mxu0 %v1092_v39 }
 0x1fb   :  { %913 = vmatpush1.bf16.msra.mxu0 %v1096_v44 }
 0x1fc   :  { %915 = vmatprep.subr.bf16.mxu0 %v1100_v45 }
 0x1ff   :  { %917 = vmatpush1.bf16.msra.mxu0 %v1104_v48 }
 0x2b5   :  { %v376_v10 = vpop.f32.mrb[2].mxu0 }
 0x2b6   :  { %v377_v11 = vadd.f32 %v376_v10, %v303_v6  ;;  %v378_v12 = vpop.f32.mrb[3].mxu0 }
 0x2b7   :  { %v379_v13 = vadd.f32 %v378_v12, %v307_v7 }
 0x2b8   :  { %492 = vmatmul.mubr.f32.vlgmr.msra.gmra.mrb[2].mxu1 %v377_v11 }
 0x2b9   :  { %381 = vst [vmem:[%s1249_s3 + $0x2] sm:$0x1] %v379_v13  ;;  %921 = vmatpush1.bf16.msra.mxu1 %v1049_v8  ;;  %725 = vmatprep.mubr.f32.mxu1 %v1006_v0  ;;  %v755_v0 = vld [vmem:[%s1246_s0 + $0x3] ss:$8 sm:$0x3] }
 0x2ba   :  { %923 = vmatprep.subr.bf16.mxu1 %v1051_v9  ;;  %v420_v8 = vrot.slane %v755_v0, %v1133_v52  ;;  %v424_v9 = vrot.slane %v755_v0, %v1138_v54 }
 0x2bd   :  { %925 = vmatpush1.bf16.msra.mxu1 %v1056_v14 }
 0x2be   :  { %927 = vmatprep.subr.bf16.mxu1 %v1060_v15 }
 0x2c1   :  { %929 = vmatpush1.bf16.msra.mxu1 %v1064_v20  ;;  %v541_v20 = vrot.slane %v756_v18, %v1138_v54 }
 0x2c2   :  { %931 = vmatprep.subr.bf16.mxu1 %v1068_v21 }
 0x2c5   :  { %933 = vmatpush1.bf16.msra.mxu1 %v1072_v26  ;;  %v654_v26 = vrot.slane %v757_v25, %v1133_v52 }
 0x2c6   :  { %935 = vmatprep.subr.bf16.mxu1 %v1076_v27  ;;  %v658_v27 = vrot.slane %v757_v25, %v1138_v54 }
 0x2c9   :  { %937 = vmatpush1.bf16.msra.mxu1 %v1080_v32 }
 0x2ca   :  { %939 = vmatprep.subr.bf16.mxu1 %v1084_v33 }
 0x2cd   :  { %941 = vmatpush1.bf16.msra.mxu1 %v1088_v38 }
 0x2ce   :  { %943 = vmatprep.subr.bf16.mxu1 %v1092_v39 }
 0x2d1   :  { %945 = vmatpush1.bf16.msra.mxu1 %v1096_v44 }
 0x2d2   :  { %947 = vmatprep.subr.bf16.mxu1 %v1100_v45 }
 0x2d5   :  { %949 = vmatpush1.bf16.msra.mxu1 %v1104_v48 }
 0x38b   :  { %v493_v14 = vpop.f32.mrb[2].mxu1 }
 0x38c   :  { %v494_v15 = vadd.f32 %v493_v14, %v420_v8  ;;  %v495_v16 = vpop.f32.mrb[3].mxu1 }
 0x38d   :  { %v496_v17 = vadd.f32 %v495_v16, %v424_v9 }
 0x38e   :  { %609 = vmatmul.mubr.f32.vlgmr.msra.gmra.mrb[4].mxu0 %v494_v15 }
 0x38f   :  { %498 = vst [vmem:[%s1249_s3 + $0x3] sm:$0x1] %v496_v17 }
 0x461   :  { %v610_v21 = vpop.f32.mrb[4].mxu0 }
 0x462   :  { %v611_v22 = vadd.f32 %v610_v21, %v537_v19  ;;  %v612_v23 = vpop.f32.mrb[5].mxu0 }
 0x463   :  { %v613_v24 = vadd.f32 %v612_v23, %v541_v20 }
 0x464   :  { %726 = vmatmul.mubr.f32.vlgmr.msra.gmra.mrb[4].mxu1 %v611_v22 }
 0x465   :  { %615 = vst [vmem:[%s1249_s3 + $0x4] sm:$0x1] %v613_v24 }
 0x537   :  { %v727_v28 = vpop.f32.mrb[4].mxu1 }
 0x538   :  { %v728_v29 = vadd.f32 %v727_v28, %v654_v26  ;;  %v729_v30 = vpop.f32.mrb[5].mxu1 }
 0x539   :  { %v730_v31 = vadd.f32 %v729_v30, %v658_v27 }
 0x53a   :  { %733 = vst [vmem:[#allocation5] sm:$0x1] %v728_v29 }
 0x53b   :  { %732 = vst [vmem:[%s1249_s3 + $0x5] sm:$0x1] %v730_v31 }
 0x53c   :  { %988 = shalt.err (!%p985_p12)
}
 0x53d   :  { %s989_s30 = scalar_lea.hbm %s1250_s4, 16 }
 0x53e   :  { %p990_p13 = scmp.ne.s32.totalorder %s1250_s4, %s989_s30  ;;  %p993_p0 = scmp.lt.u32.totalorder %s989_s30, %s1250_s4 }
 0x540   :  { %p995_p1 = pnand %p993_p0, %p990_p13 }
 0x542   :  { %998 = shalt.err (!%p995_p1)
}
 0x543   :  { %745 = dma.vmem_to_hbm [thread:$0]  %s743_s26, 16, %s1250_s4, [#allocation4]  }
 0x544   :  { %1001 = dma.done.wait [#allocation4], 16  }
 0x545   :  { %1002 = vsyncadd [#allocation4], 4294967280 }
 0x546   :  { %751 = vsyncpa [#allocation3], 1 }
 0x547   :  { %752 = vsyncpa [#allocation4], 1 }

</bundles_post_ra>
